<compile_context>
chip_gen: v5e
topology: v5e:2x2
jax: 0.10.0
libtpu: 0.0.40
codegen_flags: <defaults>
</compile_context>

<pallas_src>
import jax
import jax.numpy as jnp
from jax.experimental import pallas as pl
from jax.experimental.pallas import tpu as pltpu


def _round_up(x, m):
    return ((x + m - 1) // m) * m


def _default_fold_k():
    """k=8 for 256-deep MXUs (v6e/v7x), k=4 for 128-deep MXUs (v5e and older)."""
    try:
        kind = jax.devices()[0].device_kind.lower()
        if any(tag in kind for tag in ("v2", "v3", "v4", "v5")):
            return 4
    except Exception:
        pass
    return 8


def logreg_kernel(x_ref, w_ref, b_ref, out_ref):
    # x_ref:   (tile_m, k*F) VMEM  -- tile_m folded rows = tile_m*k samples
    # w_ref:   (k*F, k)      VMEM  -- block-diagonal weight, resident across grid steps
    # b_ref:   (1, 1)        SMEM  -- scalar bias
    # out_ref: (tile_m, k)   VMEM  -- probabilities; column j is sample (row*k + j)
    logits = jnp.dot(x_ref[...], w_ref[...], preferred_element_type=jnp.float32)
    out_ref[...] = jax.nn.sigmoid(logits + b_ref[0, 0]).astype(out_ref.dtype)


def logistic_regression_forward(x, weight, bias, *, fold_k=None, tile_m=4096,
                                compute_dtype=None):
    """x: [N, F]; weight: [1, F] (PyTorch nn.Linear layout); bias: [1]. Returns [N, 1]."""
    N, F = x.shape
    out_dtype = x.dtype

    k = int(fold_k) if fold_k is not None else _default_fold_k()
    k = max(1, k)

    if compute_dtype is not None:
        x = x.astype(compute_dtype)          # e.g. bf16: halves HBM traffic, f32 accumulation kept
    dt = x.dtype

    # Pad N up to a multiple of k*8 so the folded batch dim M is a multiple of the sublane size.
    # Zero-padded samples produce sigmoid(bias) and are clipped off below (never returned).
    n_pad = _round_up(max(N, 1), k * 8)
    if n_pad != N:
        x = jnp.pad(x, ((0, n_pad - N), (0, 0)))
    M = n_pad // k
    KF = k * F
    x_folded = x.reshape(M, KF)              # row-major: row m holds samples m*k .. m*k + k-1

    # Block-diagonal weight: W_bd[j*F:(j+1)*F, j] = w, so column j recovers sample (m*k + j)'s logit.
    w_vec = weight.reshape(F).astype(dt)
    w_bd = jnp.kron(jnp.eye(k, dtype=dt), w_vec.reshape(F, 1))   # (k*F, k)
    b_2d = bias.reshape(1, 1).astype(jnp.float32)

    # Clamp tile_m: multiple of 8 (sublane), never larger than the (8-aligned) folded batch.
    tile_m = max(8, min(int(tile_m), M))
    tile_m = _round_up(tile_m, 8)
    num_tiles = pl.cdiv(M, tile_m)

    out = pl.pallas_call(
        logreg_kernel,
        out_shape=jax.ShapeDtypeStruct((num_tiles * tile_m, k), out_dtype),
        grid=(num_tiles,),
        in_specs=[
            pl.BlockSpec((tile_m, KF), lambda i: (i, 0)),          # x: one folded batch tile / step
            pl.BlockSpec((KF, k), lambda i: (0, 0)),               # block-diag weight: resident
            pl.BlockSpec(memory_space=pltpu.MemorySpace.SMEM),     # bias: scalar in SMEM
        ],
        out_specs=pl.BlockSpec((tile_m, k), lambda i: (i, 0)),
        compiler_params=pltpu.CompilerParams(
            dimension_semantics=("parallel",),                     # v7x: shard batch over 2 TCs
            vmem_limit_bytes=28 * 1024 * 1024,                     # under v7x scoped / v5e physical
        ),
        cost_estimate=pl.CostEstimate(
            flops=2 * N * F,
            transcendentals=N,
            bytes_accessed=N * F * dt.itemsize
            + N * jnp.dtype(out_dtype).itemsize
            + KF * k * dt.itemsize,
        ),
    )(x_folded, w_bd, b_2d)

    # Flattened sample order is m*k + j; entries >= N are padding garbage -- clip them off.
    # (Do not reuse the uncropped (num_tiles*tile_m, k) slab elsewhere.)
    return out.reshape(-1)[:N].reshape(N, 1)


if __name__ == "__main__":
    # Small deterministic example consistent with the module
    # (credit-card-fraud style: 30 features, 1 logit, small batch).
    N, F = 8, 30
    key = jax.random.PRNGKey(0)
    kx, kw, kb = jax.random.split(key, 3)

    x = jax.random.normal(kx, (N, F), dtype=jnp.float32)
    weight = jax.random.normal(kw, (1, F), dtype=jnp.float32) * 0.1   # nn.Linear(F, 1).weight
    bias = jax.random.normal(kb, (1,), dtype=jnp.float32) * 0.1       # nn.Linear(F, 1).bias

    y = logistic_regression_forward(x, weight, bias)
    jax.block_until_ready(y)

    # Reference: torch.sigmoid(linear(x)) in plain JAX.
    y_ref = jax.nn.sigmoid(x @ weight.T + bias)
    assert y.shape == (N, 1)
    assert jnp.allclose(y, y_ref, atol=1e-5), "mismatch vs reference"

    print("KERNEL_OK")
</pallas_src>

<mosaic_0001>
module attributes {stable_mosaic.version = 11 : i64} {
  func.func @logreg_kernel(%arg0: i32, %arg1: memref<8x240xf32, #tpu.memory_space<vmem>>, %arg2: memref<240x8xf32, #tpu.memory_space<vmem>>, %arg3: memref<1x1xf32, #tpu.memory_space<smem>>, %arg4: memref<8x8xf32, #tpu.memory_space<vmem>>) attributes {dimension_semantics = [#tpu.dimension_semantics<parallel>], iteration_bounds = array<i64: 1>, scalar_prefetch = 0 : i64, scratch_operands = 0 : i64, tpu.core_type = #tpu.core_type<tc>, window_params = [{transform_indices = @transform_0, window_bounds = array<i64: 8, 240>}, {pipeline_mode = #tpu.pipeline_mode<synchronous>, transform_indices = @transform_1, window_bounds = array<i64: 240, 8>}, {transform_indices = @transform_2, window_bounds = array<i64: 1, 1>}, {transform_indices = @transform_3, window_bounds = array<i64: 8, 8>}]} {
    %c0 = arith.constant 0 : index
    %c0_0 = arith.constant 0 : index
    %0 = vector.load %arg1[%c0, %c0_0] : memref<8x240xf32, #tpu.memory_space<vmem>>, vector<8x240xf32>
    %c0_1 = arith.constant 0 : index
    %c0_2 = arith.constant 0 : index
    %1 = vector.load %arg2[%c0_1, %c0_2] : memref<240x8xf32, #tpu.memory_space<vmem>>, vector<240x8xf32>
    %cst = arith.constant dense<0.000000e+00> : vector<8x8xf32>
    %2 = tpu.matmul %0, %1, %cst {dimension_numbers = #tpu.dot_dimension_numbers<[1], [0], [0], [1], [0, 0, 1, 1], [], []>} : vector<8x240xf32>, vector<240x8xf32>, vector<8x8xf32> -> vector<8x8xf32>
    %c0_3 = arith.constant 0 : index
    %c0_4 = arith.constant 0 : index
    %3 = memref.load %arg3[%c0_3, %c0_4] : memref<1x1xf32, #tpu.memory_space<smem>>
    %4 = vector.broadcast %3 : f32 to vector<8x8xf32>
    %5 = arith.addf %2, %4 : vector<8x8xf32>
    %6 = arith.negf %5 : vector<8x8xf32>
    %7 = math.exp %6 : vector<8x8xf32>
    %cst_5 = arith.constant 1.000000e+00 : f32
    %8 = vector.broadcast %cst_5 : f32 to vector<8x8xf32>
    %9 = arith.addf %8, %7 : vector<8x8xf32>
    %10 = arith.divf %8, %9 : vector<8x8xf32>
    %c0_6 = arith.constant 0 : index
    %c0_7 = arith.constant 0 : index
    %11 = vector.load %arg4[%c0_6, %c0_7] : memref<8x8xf32, #tpu.memory_space<vmem>>, vector<8x8xf32>
    tpu.vector_store %arg4[%c0_6, %c0_7], %10 {strides = array<i32>} : memref<8x8xf32, #tpu.memory_space<vmem>>, vector<8x8xf32>,
    return
  }
  func.func @transform_0(%arg0: i32) -> (i32, i32) {
    %c0_i32 = arith.constant 0 : i32
    %c0_i32_0 = arith.constant 0 : i32
    return %arg0, %c0_i32 : i32, i32
  }
  func.func @transform_1(%arg0: i32) -> (i32, i32) {
    %c0_i32 = arith.constant 0 : i32
    %c0_i32_0 = arith.constant 0 : i32
    %c0_i32_1 = arith.constant 0 : i32
    return %c0_i32, %c0_i32_0 : i32, i32
  }
  func.func @transform_2(%arg0: i32) -> (i32, i32) {
    %c0_i32 = arith.constant 0 : i32
    %c0_i32_0 = arith.constant 0 : i32
    %c0_i32_1 = arith.constant 0 : i32
    return %c0_i32, %c0_i32_0 : i32, i32
  }
  func.func @transform_3(%arg0: i32) -> (i32, i32) {
    %c0_i32 = arith.constant 0 : i32
    %c0_i32_0 = arith.constant 0 : i32
    return %arg0, %c0_i32 : i32, i32
  }
}

</mosaic_0001>

<bundles_post_ra>
// kernel: tpu_custom_call.1
= control target key start
LH: loop header
LB: loop body
LE: loop exit
PB: predicated region body
PF: predicated region fallthrough
CT: control target
= control target key end

     0   :  { %s287_s0 = inlined_call_operand.vmem [shape: f32[8,240], index: 0, kind: input, shape index: {}]   ;;  %s288_s1 = inlined_call_operand.vmem [shape: f32[240,8], index: 1, kind: input, shape index: {}]   ;;  %s289_s2 = inlined_call_operand.<no memory space> [shape: f32[1,1], index: 2, kind: input, shape index: {}]   ;;  %s290_s3 = inlined_call_operand.hbm [shape: f32[8,8], index: 3, kind: output, shape index: {}]  }
   0x1   :  { %v33_v0 = vld [vmem:[%s288_s1 + $0x78] sm:$0xff]  ;;  %v32_v1 = vld [vmem:[%s288_s1 + $0x70] sm:$0xff]  ;;  %v47_v2 = vld [vmem:[%s288_s1 + $0xe8] sm:$0xff] }
   0x2   :  { %54 = vmatpush.msra.mxu0 %v33_v0  ;;  %v31_v3 = vld [vmem:[%s288_s1 + $0x68] sm:$0xff]  ;;  %76 = vmatpush.msra.mxu1 %v47_v2  ;;  %v46_v4 = vld [vmem:[%s288_s1 + $0xe0] sm:$0xff]  ;;  %v45_v5 = vld [vmem:[%s288_s1 + $0xd8] sm:$0xff] }
   0x3   :  { %v30_v6 = vld [vmem:[%s288_s1 + $0x60] sm:$0xff]  ;;  %v44_v7 = vld [vmem:[%s288_s1 + $0xd0] sm:$0xff]  ;;  %v29_v8 = vld [vmem:[%s288_s1 + $0x58] sm:$0xff] }
   0x4   :  { %55 = vmatpush.msra.mxu0 %v32_v1  ;;  %77 = vmatpush.msra.mxu1 %v46_v4  ;;  %v43_v9 = vld [vmem:[%s288_s1 + $0xc8] sm:$0xff]  ;;  %v28_v10 = vld [vmem:[%s288_s1 + $0x50] sm:$0xff]  ;;  %v42_v11 = vld [vmem:[%s288_s1 + $0xc0] sm:$0xff] }
   0x5   :  { %v27_v12 = vld [vmem:[%s288_s1 + $0x48] sm:$0xff] }
   0x6   :  { %56 = vmatpush.msra.mxu0 %v31_v3  ;;  %78 = vmatpush.msra.mxu1 %v45_v5 }
   0x8   :  { %57 = vmatpush.msra.mxu0 %v30_v6  ;;  %79 = vmatpush.msra.mxu1 %v44_v7 }
   0xa   :  { %58 = vmatpush.msra.mxu0 %v29_v8  ;;  %80 = vmatpush.msra.mxu1 %v43_v9 }
   0xb   :  { %9 = vsyncpa [#allocation4], 0  ;;  %v41_v13 = vld [vmem:[%s288_s1 + $0xb8] sm:$0xff]  ;;  %v26_v14 = vld [vmem:[%s288_s1 + $0x40] sm:$0xff]  ;;  %vm50_vm0 = vcmask 916480   ;;  %v49_v32 = vstv %s289_s2  ;;  %s122_s25 = sshll.u32 %s290_s3, 4  ;;  %s123_s25 = int_to_ptr.hbm [resolvable:$true] %s122_s25 }
   0xc   :  { %59 = vmatpush.msra.mxu0 %v28_v10  ;;  %81 = vmatpush.msra.mxu1 %v42_v11  ;;  %v40_v15 = vld [vmem:[%s288_s1 + $0xb0] sm:$0xff]  ;;  %v25_v16 = vld [vmem:[%s288_s1 + $0x38] sm:$0xff]  ;;  %v39_v17 = vld [vmem:[%s288_s1 + $0xa8] sm:$0xff]  ;;  %vm113_vm4 = vcmask 64512  }
   0xd   :  { %v24_v18 = vld [vmem:[%s288_s1 + $0x30] sm:$0xff]  ;;  %v38_v19 = vld [vmem:[%s288_s1 + $0xa0] sm:$0xff]  ;;  %v23_v20 = vld [vmem:[%s288_s1 + $0x28] sm:$0xff] }
   0xe   :  { %60 = vmatpush.msra.mxu0 %v27_v12  ;;  %82 = vmatpush.msra.mxu1 %v41_v13  ;;  %v37_v21 = vld [vmem:[%s288_s1 + $0x98] sm:$0xff]  ;;  %v22_v22 = vld [vmem:[%s288_s1 + $0x20] sm:$0xff]  ;;  %v36_v23 = vld [vmem:[%s288_s1 + $0x90] sm:$0xff] }
   0xf   :  { %v21_v24 = vld [vmem:[%s288_s1 + $0x18] sm:$0xff]  ;;  %v35_v25 = vld [vmem:[%s288_s1 + $0x88] sm:$0xff]  ;;  %v20_v26 = vld [vmem:[%s288_s1 + $0x10] sm:$0xff] }
  0x10   :  { %61 = vmatpush.msra.mxu0 %v26_v14  ;;  %83 = vmatpush.msra.mxu1 %v40_v15  ;;  %v34_v27 = vld [vmem:[%s288_s1 + $0x80] sm:$0xff]  ;;  %v19_v28 = vld [vmem:[%s288_s1 + $0x8] sm:$0xff] }
  0x11   :  { %v17_v29 = vld [vmem:[%s287_s0 + $0x8] sm:$0xff]  ;;  %v18_v30 = vld [vmem:[%s288_s1] sm:$0xff] }
  0x12   :  { %62 = vmatpush.msra.mxu0 %v25_v16  ;;  %84 = vmatpush.msra.mxu1 %v39_v17  ;;  %v16_v31 = vld [vmem:[%s287_s0] sm:$0xff]  ;;  %s164_s0 = smov [#allocation3]  }
  0x13   :  { %s120_s1 = sshll.u32 %s164_s0, 4  ;;  %s121_s1 = int_to_ptr.vmem [resolvable:$true] %s120_s1 }
  0x14   :  { %63 = vmatpush.msra.mxu0 %v24_v18  ;;  %85 = vmatpush.msra.mxu1 %v38_v19 }
  0x16   :  { %64 = vmatpush.msra.mxu0 %v23_v20  ;;  %86 = vmatpush.msra.mxu1 %v37_v21 }
  0x18   :  { %65 = vmatpush.msra.mxu0 %v22_v22  ;;  %87 = vmatpush.msra.mxu1 %v36_v23 }
  0x1a   :  { %66 = vmatpush.msra.mxu0 %v21_v24  ;;  %88 = vmatpush.msra.mxu1 %v35_v25 }
  0x1c   :  { %67 = vmatpush.msra.mxu0 %v20_v26  ;;  %89 = vmatpush.msra.mxu1 %v34_v27 }
  0x1d   :  { %131 = vmatmul.msk.f32.vlgmr.msra.gmra.mxu1 %vm50_vm0, %v17_v29 }
  0x1e   :  { %68 = vmatpush.msra.mxu0 %v19_v28 }
  0x20   :  { %69 = vmatpush.msra.mxu0 %v18_v30 }
  0x21   :  { %70 = vmatmul.f32.vlgmr.msra.gmra.mxu0 %v16_v31 }
  0x9a   :  { %v91_v34 = vpop.f32.mrf.mxu1 }
  0x9e   :  { %v71_v33 = vpop.f32.mrf.mxu0 }
  0x9f   :  { %v72_v35 = vadd.f32 %v71_v33, %v49_v32 }
  0xa1   :  { %v92_v36 = vadd.f32 %v91_v34, %v72_v35 }
  0xa3   :  { %v132_v37 = vmul.f32 -1.442695, %v92_v36 }
  0xa5   :  { %134 = vpow2.f32 %v132_v37 }
  0xab   :  { %v135_v38 = vpop.eup %134 }
  0xac   :  { %v97_v39 = vadd.f32 1.0, %v135_v38 }
  0xae   :  { %136 = vrcp.f32 %v97_v39  ;;  %v109_v43 = vand.u32 2147483648, %v97_v39  ;;  %v107_v45 = vand.u32 2147483647, %v97_v39  ;;  %vm103_vm2 = vweird.f32 %v97_v39 }
  0xb0   :  { %v110_v47 = vor.u32 1.1754944e-38, %v109_v43  ;;  %vm108_vm5 = vcmp.eq.f32.partialorder %v107_v45, 8.507059e+37 }
  0xb4   :  { %v137_v40 = vpop.eup %136 }
  0xb5   :  { %v99_v41 = vmul.f32 %v137_v40, %v97_v39  ;;  %vm104_vm1 = vweird.f32 %v137_v40 }
  0xb6   :  { %vm105_vm3 = vmor %vm103_vm2, %vm104_vm1 }
  0xb7   :  { %v100_v42 = vsub.f32 1.0, %v99_v41 }
  0xb9   :  { %v101_v44 = vmul.f32 %v137_v40, %v100_v42 }
  0xbb   :  { %v102_v46 = vadd.f32 %v137_v40, %v101_v44 }
  0xbd   :  { %v106_v48 = vsel %vm105_vm3, %v137_v40, %v102_v46 }
  0xbe   :  { %v111_v49 = vsel %vm108_vm5, %v110_v47, %v106_v48 }
  0xbf   :  { %114 = vst.msk [vmem:[#allocation3] sm:$0xff] %vm113_vm4, %v111_v49 }
  0xc0   :  { %125 = dma.vmem_to_hbm [thread:$0]  %s121_s1, 128, %s123_s25, [#allocation4]  }
  0xc1   :  { %162 = dma.done.wait [#allocation4], 128  }
  0xc2   :  { %163 = vsyncadd [#allocation4], 4294967168 }
  0xc3   :  { %130 = vsyncpa [#allocation4], 1 }

</bundles_post_ra>
